<compile_context>
chip_gen: v7x
topology: tpu7x:2x2x1
jax: 0.10.0
libtpu: 0.0.40
codegen_flags: <defaults>
</compile_context>

<pallas_src>
import functools

import jax
import jax.numpy as jnp
from jax.experimental import pallas as pl
from jax.experimental.pallas import tpu as pltpu


def _cell_linear_attention_kernel(
    x_ref,      # (R*C, E)  flattened input rows
    wqk_ref,    # (E, 2E)   [Wq.T | Wk.T]
    wv_ref,     # (E, E)    Wv.T
    bqk_ref,    # (1, 2E)   [bq | bk]
    bv_ref,     # (1, E)
    mask_ref,   # (E, E)    block-diagonal ones (1 where columns belong to same head)
    out_ref,    # (R*C, E)
    attn_ref,   # (H*C, C)
    *,
    num_rows: int,
    num_heads: int,
):
    RC, E = x_ref.shape
    R = num_rows
    C = RC // R
    H = num_heads
    D = E // H
    scale = float(D) ** (-0.5)

    x = x_ref[...]          # (R*C, E)
    mask = mask_ref[...]    # (E, E)

    # ---- mean over rows (R cheap VPU adds) ----------------------------------
    x_mean = x[0:C, :]
    for r in range(1, R):
        x_mean = x_mean + x[r * C:(r + 1) * C, :]
    x_mean = x_mean * (1.0 / float(R))                       # (C, E)

    # ---- fused q/k projection (single MXU op), bias added once --------------
    qk = (
        jnp.dot(x_mean, wqk_ref[...], preferred_element_type=jnp.float32)
        + bqk_ref[...]
    )                                                         # (C, 2E)
    q_m = qk[:, :E]                                           # (C, E)
    k_m = qk[:, E:]                                           # (C, E)

    # ---- fused v projection over all rows (single MXU op) -------------------
    v_all = (
        jnp.dot(x, wv_ref[...], preferred_element_type=jnp.float32)
        + bv_ref[...]
    )                                                         # (R*C, E)

    # ---- q: per-head softmax over D, kept lane-dense -------------------------
    # Subtracting the per-row global max (>= every per-head max) is exact for a
    # per-head softmax; segmented sums come from one matmul with the block-diag mask.
    row_max = jnp.max(q_m, axis=-1, keepdims=True)            # (C, 1)
    eq = jnp.exp(q_m - row_max)                               # (C, E)  EUP
    seg_sum = jnp.dot(eq, mask, preferred_element_type=jnp.float32)   # (C, E)
    q_sm = eq * pl.reciprocal(seg_sum, approx=False) * scale  # (C, E)

    # ---- k: softmax over the C axis (independent per feature column) --------
    col_max = jnp.max(k_m, axis=0, keepdims=True)             # (1, E)
    ek = jnp.exp(k_m - col_max)                               # (C, E)
    col_sum = jnp.sum(ek, axis=0, keepdims=True)              # (1, E)
    k_sm = ek * pl.reciprocal(col_sum, approx=False)          # (C, E)

    # ---- attention weights: H tiny matmuls, one bulk store ------------------
    attn_rows = []
    for h in range(H):
        sl = slice(h * D, (h + 1) * D)
        attn_rows.append(
            jnp.dot(q_sm[:, sl], k_sm[:, sl].T, preferred_element_type=jnp.float32)
        )                                                     # (C, C)
    attn_ref[...] = jnp.concatenate(attn_rows, axis=0).astype(attn_ref.dtype)

    # ---- linear-attention output, lane-dense per row -------------------------
    #   ctx_r  = blockdiag_h(k_h^T @ v_{r,h}) = (k_sm^T @ v_r) * mask   (E, E)
    #   out_r  = q_sm @ ctx_r                                           (C, E)
    kt = k_sm.T                                               # (E, C)
    out_rows = []
    for r in range(R):
        v_r = v_all[r * C:(r + 1) * C, :]                     # (C, E)
        ctx = jnp.dot(kt, v_r, preferred_element_type=jnp.float32) * mask  # (E, E)
        out_rows.append(
            jnp.dot(q_sm, ctx, preferred_element_type=jnp.float32)         # (C, E)
        )
    out_ref[...] = jnp.concatenate(out_rows, axis=0).astype(out_ref.dtype)


def cell_linear_attention(x, wq, bq, wk, bk, wv, bv, num_heads):
    """x: (R, C, E) float32. Weights in PyTorch Linear convention: y = x @ W.T + b."""
    R, C, E = x.shape
    H = num_heads
    assert E % H == 0
    D = E // H

    # One-time parameter prep (cheap; in production hoist outside the jitted call).
    wqk_t = jnp.concatenate([wq.T, wk.T], axis=1)                     # (E, 2E)
    bqk = jnp.concatenate([bq, bk]).reshape(1, 2 * E)                 # (1, 2E)
    wv_t = wv.T                                                       # (E, E)
    bv2 = bv.reshape(1, E)                                            # (1, E)
    head_mask = jnp.kron(
        jnp.eye(H, dtype=jnp.float32), jnp.ones((D, D), dtype=jnp.float32)
    )                                                                 # (E, E)

    kernel = functools.partial(
        _cell_linear_attention_kernel, num_rows=R, num_heads=H
    )

    vmem = pl.BlockSpec(memory_space=pltpu.MemorySpace.VMEM)
    out_flat, attn_flat = pl.pallas_call(
        kernel,
        out_shape=(
            jax.ShapeDtypeStruct((R * C, E), jnp.float32),
            jax.ShapeDtypeStruct((H * C, C), jnp.float32),
        ),
        in_specs=[vmem] * 6,
        out_specs=(vmem, vmem),
    )(
        x.reshape(R * C, E),   # contiguous (metadata-only) reshape
        wqk_t,
        wv_t,
        bqk,
        bv2,
        head_mask,
    )
    # Contiguous reshapes back to the module's output layout (no data movement).
    return out_flat.reshape(R, C, E), attn_flat.reshape(H, C, C)


def _reference(x, wq, bq, wk, bk, wv, bv, num_heads):
    """Pure-JAX mirror of Cell_Linear_Attention.pred for verification."""
    R, C, E = x.shape
    H = num_heads
    D = E // H
    q = x @ wq.T + bq
    k = x @ wk.T + bk
    v = x @ wv.T + bv
    q = q.reshape(R, C, H, D).transpose(0, 2, 1, 3).mean(0)  # (H, C, D)
    k = k.reshape(R, C, H, D).transpose(0, 2, 1, 3).mean(0)  # (H, C, D)
    v = v.reshape(R, C, H, D).transpose(0, 2, 1, 3)          # (R, H, C, D)
    q = jax.nn.softmax(q, axis=-1) * D ** (-0.5)
    k = jax.nn.softmax(k, axis=-2)
    attn_w = jnp.einsum("hcd,hed->hce", q, k)                # (H, C, C)
    ctx = jnp.einsum("hnd,bhne->bhde", k, v)                 # (R, H, D, D)
    out = jnp.einsum("hnd,bhde->bhne", q, ctx)               # (R, H, C, D)
    out = out.transpose(0, 2, 1, 3).reshape(R, C, E)
    return out, attn_w


if __name__ == "__main__":
    # Small shapes consistent with the module: x is (num_rows, num_cols, embed_dim).
    R, C, E, H = 4, 8, 32, 4

    key = jax.random.PRNGKey(0)
    kx, kwq, kbq, kwk, kbk, kwv, kbv = jax.random.split(key, 7)

    x = jax.random.normal(kx, (R, C, E), dtype=jnp.float32)
    # Deterministic synthetic parameters (nn.Linear(E, E) shapes: W (E,E), b (E,)).
    wq = jax.random.normal(kwq, (E, E), dtype=jnp.float32) * 0.1
    bq = jax.random.normal(kbq, (E,), dtype=jnp.float32) * 0.1
    wk = jax.random.normal(kwk, (E, E), dtype=jnp.float32) * 0.1
    bk = jax.random.normal(kbk, (E,), dtype=jnp.float32) * 0.1
    wv = jax.random.normal(kwv, (E, E), dtype=jnp.float32) * 0.1
    bv = jax.random.normal(kbv, (E,), dtype=jnp.float32) * 0.1

    out, attn = cell_linear_attention(x, wq, bq, wk, bk, wv, bv, H)
    out = jax.block_until_ready(out)
    attn = jax.block_until_ready(attn)

    out_ref, attn_ref = _reference(x, wq, bq, wk, bk, wv, bv, H)
    assert out.shape == (R, C, E) and attn.shape == (H, C, C)
    assert jnp.allclose(out, out_ref, rtol=1e-5, atol=1e-5)
    assert jnp.allclose(attn, attn_ref, rtol=1e-5, atol=1e-5)

    print("KERNEL_OK")
</pallas_src>

<mosaic_0001>
module attributes {stable_mosaic.version = 11 : i64} {
  func.func @_cell_linear_attention_kernel(%arg0: memref<32x32xf32, #tpu.memory_space<vmem>>, %arg1: memref<32x64xf32, #tpu.memory_space<vmem>>, %arg2: memref<32x32xf32, #tpu.memory_space<vmem>>, %arg3: memref<1x64xf32, #tpu.memory_space<vmem>>, %arg4: memref<1x32xf32, #tpu.memory_space<vmem>>, %arg5: memref<32x32xf32, #tpu.memory_space<vmem>>, %arg6: memref<32x32xf32, #tpu.memory_space<vmem>>, %arg7: memref<32x8xf32, #tpu.memory_space<vmem>>) attributes {dimension_semantics = [], scalar_prefetch = 0 : i64, scratch_operands = 0 : i64, tpu.core_type = #tpu.core_type<tc>} {
    %c0 = arith.constant 0 : index
    %c0_0 = arith.constant 0 : index
    %0 = vector.load %arg0[%c0, %c0_0] : memref<32x32xf32, #tpu.memory_space<vmem>>, vector<32x32xf32>
    %c0_1 = arith.constant 0 : index
    %c0_2 = arith.constant 0 : index
    %1 = vector.load %arg5[%c0_1, %c0_2] : memref<32x32xf32, #tpu.memory_space<vmem>>, vector<32x32xf32>
    %2 = vector.extract_strided_slice %0 {offsets = [0, 0], sizes = [8, 32], strides = [1, 1]} : vector<32x32xf32> to vector<8x32xf32>
    %3 = vector.extract_strided_slice %0 {offsets = [8, 0], sizes = [8, 32], strides = [1, 1]} : vector<32x32xf32> to vector<8x32xf32>
    %4 = arith.addf %2, %3 : vector<8x32xf32>
    %5 = vector.extract_strided_slice %0 {offsets = [16, 0], sizes = [8, 32], strides = [1, 1]} : vector<32x32xf32> to vector<8x32xf32>
    %6 = arith.addf %4, %5 : vector<8x32xf32>
    %7 = vector.extract_strided_slice %0 {offsets = [24, 0], sizes = [8, 32], strides = [1, 1]} : vector<32x32xf32> to vector<8x32xf32>
    %8 = arith.addf %6, %7 : vector<8x32xf32>
    %cst = arith.constant 2.500000e-01 : f32
    %9 = vector.broadcast %cst : f32 to vector<8x32xf32>
    %10 = arith.mulf %8, %9 : vector<8x32xf32>
    %c0_3 = arith.constant 0 : index
    %c0_4 = arith.constant 0 : index
    %11 = vector.load %arg1[%c0_3, %c0_4] : memref<32x64xf32, #tpu.memory_space<vmem>>, vector<32x64xf32>
    %cst_5 = arith.constant dense<0.000000e+00> : vector<8x64xf32>
    %12 = tpu.matmul %10, %11, %cst_5 {dimension_numbers = #tpu.dot_dimension_numbers<[1], [0], [0], [1], [0, 0, 1, 1], [], []>} : vector<8x32xf32>, vector<32x64xf32>, vector<8x64xf32> -> vector<8x64xf32>
    %c0_6 = arith.constant 0 : index
    %c0_7 = arith.constant 0 : index
    %13 = vector.load %arg3[%c0_6, %c0_7] : memref<1x64xf32, #tpu.memory_space<vmem>>, vector<1x64xf32>
    %14 = vector.broadcast %13 : vector<1x64xf32> to vector<8x64xf32>
    %15 = arith.addf %12, %14 : vector<8x64xf32>
    %16 = vector.extract_strided_slice %15 {offsets = [0, 0], sizes = [8, 32], strides = [1, 1]} : vector<8x64xf32> to vector<8x32xf32>
    %17 = vector.extract_strided_slice %15 {offsets = [0, 32], sizes = [8, 32], strides = [1, 1]} : vector<8x64xf32> to vector<8x32xf32>
    %c0_8 = arith.constant 0 : index
    %c0_9 = arith.constant 0 : index
    %18 = vector.load %arg2[%c0_8, %c0_9] : memref<32x32xf32, #tpu.memory_space<vmem>>, vector<32x32xf32>
    %cst_10 = arith.constant dense<0.000000e+00> : vector<32x32xf32>
    %19 = tpu.matmul %0, %18, %cst_10 {dimension_numbers = #tpu.dot_dimension_numbers<[1], [0], [0], [1], [0, 0, 1, 1], [], []>} : vector<32x32xf32>, vector<32x32xf32>, vector<32x32xf32> -> vector<32x32xf32>
    %c0_11 = arith.constant 0 : index
    %c0_12 = arith.constant 0 : index
    %20 = vector.load %arg4[%c0_11, %c0_12] : memref<1x32xf32, #tpu.memory_space<vmem>>, vector<1x32xf32>
    %21 = vector.broadcast %20 : vector<1x32xf32> to vector<32x32xf32>
    %22 = arith.addf %19, %21 : vector<32x32xf32>
    %cst_13 = arith.constant dense<0xFF800000> : vector<8xf32>
    %23 = vector.multi_reduction <maximumf>, %16, %cst_13 [1] : vector<8x32xf32> to vector<8xf32>
    %24 = vector.shape_cast %23 : vector<8xf32> to vector<8x1xf32>
    %25 = vector.broadcast %24 : vector<8x1xf32> to vector<8x32xf32>
    %26 = arith.subf %16, %25 : vector<8x32xf32>
    %27 = math.exp %26 : vector<8x32xf32>
    %cst_14 = arith.constant dense<0.000000e+00> : vector<8x32xf32>
    %28 = tpu.matmul %27, %1, %cst_14 {dimension_numbers = #tpu.dot_dimension_numbers<[1], [0], [0], [1], [0, 0, 1, 1], [], []>} : vector<8x32xf32>, vector<32x32xf32>, vector<8x32xf32> -> vector<8x32xf32>
    %29 = tpu.reciprocal %28 : vector<8x32xf32> -> vector<8x32xf32>
    %30 = arith.mulf %27, %29 : vector<8x32xf32>
    %cst_15 = arith.constant 0.353553385 : f32
    %31 = vector.broadcast %cst_15 : f32 to vector<8x32xf32>
    %32 = arith.mulf %30, %31 : vector<8x32xf32>
    %cst_16 = arith.constant dense<0xFF800000> : vector<32xf32>
    %33 = vector.multi_reduction <maximumf>, %17, %cst_16 [0] : vector<8x32xf32> to vector<32xf32>
    %34 = vector.shape_cast %33 : vector<32xf32> to vector<1x32xf32>
    %35 = vector.broadcast %34 : vector<1x32xf32> to vector<8x32xf32>
    %36 = arith.subf %17, %35 : vector<8x32xf32>
    %37 = math.exp %36 : vector<8x32xf32>
    %cst_17 = arith.constant dense<0.000000e+00> : vector<32xf32>
    %38 = vector.multi_reduction <add>, %37, %cst_17 [0] : vector<8x32xf32> to vector<32xf32>
    %39 = vector.shape_cast %38 : vector<32xf32> to vector<1x32xf32>
    %40 = tpu.reciprocal %39 : vector<1x32xf32> -> vector<1x32xf32>
    %41 = vector.broadcast %40 : vector<1x32xf32> to vector<8x32xf32>
    %42 = arith.mulf %37, %41 : vector<8x32xf32>
    %43 = vector.extract_strided_slice %32 {offsets = [0, 0], sizes = [8, 8], strides = [1, 1]} : vector<8x32xf32> to vector<8x8xf32>
    %44 = vector.extract_strided_slice %42 {offsets = [0, 0], sizes = [8, 8], strides = [1, 1]} : vector<8x32xf32> to vector<8x8xf32>
    %45 = tpu.transpose %44, [1, 0] : vector<8x8xf32> -> vector<8x8xf32>
    %cst_18 = arith.constant dense<0.000000e+00> : vector<8x8xf32>
    %46 = tpu.matmul %43, %45, %cst_18 {dimension_numbers = #tpu.dot_dimension_numbers<[1], [0], [0], [1], [0, 0, 1, 1], [], []>} : vector<8x8xf32>, vector<8x8xf32>, vector<8x8xf32> -> vector<8x8xf32>
    %47 = vector.extract_strided_slice %32 {offsets = [0, 8], sizes = [8, 8], strides = [1, 1]} : vector<8x32xf32> to vector<8x8xf32>
    %48 = vector.extract_strided_slice %42 {offsets = [0, 8], sizes = [8, 8], strides = [1, 1]} : vector<8x32xf32> to vector<8x8xf32>
    %49 = tpu.transpose %48, [1, 0] : vector<8x8xf32> -> vector<8x8xf32>
    %cst_19 = arith.constant dense<0.000000e+00> : vector<8x8xf32>
    %50 = tpu.matmul %47, %49, %cst_19 {dimension_numbers = #tpu.dot_dimension_numbers<[1], [0], [0], [1], [0, 0, 1, 1], [], []>} : vector<8x8xf32>, vector<8x8xf32>, vector<8x8xf32> -> vector<8x8xf32>
    %51 = vector.extract_strided_slice %32 {offsets = [0, 16], sizes = [8, 8], strides = [1, 1]} : vector<8x32xf32> to vector<8x8xf32>
    %52 = vector.extract_strided_slice %42 {offsets = [0, 16], sizes = [8, 8], strides = [1, 1]} : vector<8x32xf32> to vector<8x8xf32>
    %53 = tpu.transpose %52, [1, 0] : vector<8x8xf32> -> vector<8x8xf32>
    %cst_20 = arith.constant dense<0.000000e+00> : vector<8x8xf32>
    %54 = tpu.matmul %51, %53, %cst_20 {dimension_numbers = #tpu.dot_dimension_numbers<[1], [0], [0], [1], [0, 0, 1, 1], [], []>} : vector<8x8xf32>, vector<8x8xf32>, vector<8x8xf32> -> vector<8x8xf32>
    %55 = vector.extract_strided_slice %32 {offsets = [0, 24], sizes = [8, 8], strides = [1, 1]} : vector<8x32xf32> to vector<8x8xf32>
    %56 = vector.extract_strided_slice %42 {offsets = [0, 24], sizes = [8, 8], strides = [1, 1]} : vector<8x32xf32> to vector<8x8xf32>
    %57 = tpu.transpose %56, [1, 0] : vector<8x8xf32> -> vector<8x8xf32>
    %cst_21 = arith.constant dense<0.000000e+00> : vector<8x8xf32>
    %58 = tpu.matmul %55, %57, %cst_21 {dimension_numbers = #tpu.dot_dimension_numbers<[1], [0], [0], [1], [0, 0, 1, 1], [], []>} : vector<8x8xf32>, vector<8x8xf32>, vector<8x8xf32> -> vector<8x8xf32>
    %59 = tpu.concatenate %46, %50, %54, %58 in 0 : vector<8x8xf32>, vector<8x8xf32>, vector<8x8xf32>, vector<8x8xf32> -> vector<32x8xf32>
    %c0_22 = arith.constant 0 : index
    %c0_23 = arith.constant 0 : index
    %60 = vector.load %arg7[%c0_22, %c0_23] : memref<32x8xf32, #tpu.memory_space<vmem>>, vector<32x8xf32>
    tpu.vector_store %arg7[%c0_22, %c0_23], %59 {strides = array<i32>} : memref<32x8xf32, #tpu.memory_space<vmem>>, vector<32x8xf32>,
    %61 = tpu.transpose %42, [1, 0] : vector<8x32xf32> -> vector<32x8xf32>
    %62 = vector.extract_strided_slice %22 {offsets = [0, 0], sizes = [8, 32], strides = [1, 1]} : vector<32x32xf32> to vector<8x32xf32>
    %cst_24 = arith.constant dense<0.000000e+00> : vector<32x32xf32>
    %63 = tpu.matmul %61, %62, %cst_24 {dimension_numbers = #tpu.dot_dimension_numbers<[1], [0], [0], [1], [0, 0, 1, 1], [], []>} : vector<32x8xf32>, vector<8x32xf32>, vector<32x32xf32> -> vector<32x32xf32>
    %64 = arith.mulf %63, %1 : vector<32x32xf32>
    %cst_25 = arith.constant dense<0.000000e+00> : vector<8x32xf32>
    %65 = tpu.matmul %32, %64, %cst_25 {dimension_numbers = #tpu.dot_dimension_numbers<[1], [0], [0], [1], [0, 0, 1, 1], [], []>} : vector<8x32xf32>, vector<32x32xf32>, vector<8x32xf32> -> vector<8x32xf32>
    %66 = vector.extract_strided_slice %22 {offsets = [8, 0], sizes = [8, 32], strides = [1, 1]} : vector<32x32xf32> to vector<8x32xf32>
    %cst_26 = arith.constant dense<0.000000e+00> : vector<32x32xf32>
    %67 = tpu.matmul %61, %66, %cst_26 {dimension_numbers = #tpu.dot_dimension_numbers<[1], [0], [0], [1], [0, 0, 1, 1], [], []>} : vector<32x8xf32>, vector<8x32xf32>, vector<32x32xf32> -> vector<32x32xf32>
    %68 = arith.mulf %67, %1 : vector<32x32xf32>
    %cst_27 = arith.constant dense<0.000000e+00> : vector<8x32xf32>
    %69 = tpu.matmul %32, %68, %cst_27 {dimension_numbers = #tpu.dot_dimension_numbers<[1], [0], [0], [1], [0, 0, 1, 1], [], []>} : vector<8x32xf32>, vector<32x32xf32>, vector<8x32xf32> -> vector<8x32xf32>
    %70 = vector.extract_strided_slice %22 {offsets = [16, 0], sizes = [8, 32], strides = [1, 1]} : vector<32x32xf32> to vector<8x32xf32>
    %cst_28 = arith.constant dense<0.000000e+00> : vector<32x32xf32>
    %71 = tpu.matmul %61, %70, %cst_28 {dimension_numbers = #tpu.dot_dimension_numbers<[1], [0], [0], [1], [0, 0, 1, 1], [], []>} : vector<32x8xf32>, vector<8x32xf32>, vector<32x32xf32> -> vector<32x32xf32>
    %72 = arith.mulf %71, %1 : vector<32x32xf32>
    %cst_29 = arith.constant dense<0.000000e+00> : vector<8x32xf32>
    %73 = tpu.matmul %32, %72, %cst_29 {dimension_numbers = #tpu.dot_dimension_numbers<[1], [0], [0], [1], [0, 0, 1, 1], [], []>} : vector<8x32xf32>, vector<32x32xf32>, vector<8x32xf32> -> vector<8x32xf32>
    %74 = vector.extract_strided_slice %22 {offsets = [24, 0], sizes = [8, 32], strides = [1, 1]} : vector<32x32xf32> to vector<8x32xf32>
    %cst_30 = arith.constant dense<0.000000e+00> : vector<32x32xf32>
    %75 = tpu.matmul %61, %74, %cst_30 {dimension_numbers = #tpu.dot_dimension_numbers<[1], [0], [0], [1], [0, 0, 1, 1], [], []>} : vector<32x8xf32>, vector<8x32xf32>, vector<32x32xf32> -> vector<32x32xf32>
    %76 = arith.mulf %75, %1 : vector<32x32xf32>
    %cst_31 = arith.constant dense<0.000000e+00> : vector<8x32xf32>
    %77 = tpu.matmul %32, %76, %cst_31 {dimension_numbers = #tpu.dot_dimension_numbers<[1], [0], [0], [1], [0, 0, 1, 1], [], []>} : vector<8x32xf32>, vector<32x32xf32>, vector<8x32xf32> -> vector<8x32xf32>
    %78 = tpu.concatenate %65, %69, %73, %77 in 0 : vector<8x32xf32>, vector<8x32xf32>, vector<8x32xf32>, vector<8x32xf32> -> vector<32x32xf32>
    %c0_32 = arith.constant 0 : index
    %c0_33 = arith.constant 0 : index
    %79 = vector.load %arg6[%c0_32, %c0_33] : memref<32x32xf32, #tpu.memory_space<vmem>>, vector<32x32xf32>
    tpu.vector_store %arg6[%c0_32, %c0_33], %78 {strides = array<i32>} : memref<32x32xf32, #tpu.memory_space<vmem>>, vector<32x32xf32>,
    return
  }
}

</mosaic_0001>

<bundles_post_ra>
// kernel: tpu_custom_call.1
= control target key start
LH: loop header
LB: loop body
LE: loop exit
PB: predicated region body
PF: predicated region fallthrough
CT: control target
= control target key end

     0   :  { %13 = vsyncpa [#allocation3], 0  ;;  %s2119_s0 = inlined_call_operand.hbm [shape: f32[32,32], index: 0, kind: input, shape index: {}]   ;;  %s2120_s1 = inlined_call_operand.hbm [shape: f32[32,64], index: 1, kind: input, shape index: {}]   ;;  %s2121_s2 = inlined_call_operand.hbm [shape: f32[32,32], index: 2, kind: input, shape index: {}]   ;;  %s2122_s3 = inlined_call_operand.vmem [shape: f32[1,64], index: 3, kind: input, shape index: {}]   ;;  %s2123_s4 = inlined_call_operand.vmem [shape: f32[1,32], index: 4, kind: input, shape index: {}]   ;;  %s2124_s5 = inlined_call_operand.hbm [shape: f32[32,32], index: 5, kind: input, shape index: {}]   ;;  %s2125_s6 = inlined_call_operand.hbm [shape: f32[32,32], index: 6, kind: output, shape index: {0}]   ;;  %s2126_s7 = inlined_call_operand.vmem [shape: f32[32,8], index: 7, kind: output, shape index: {1}]  }
   0x1   :  { %14 = vsyncpa [#allocation6], 0 }
   0x2   :  { %15 = vsyncpa [#allocation9], 0 }
   0x3   :  { %16 = vsyncpa [#allocation4], 0  ;;  %s1836_s24 = smov [#allocation5]   ;;  %s1837_s26 = smov [#allocation2]  }
   0x4   :  { %s34_s25 = sshll.u32 %s1836_s24, 4  ;;  %s22_s27 = sshll.u32 %s1837_s26, 4  ;;  %s35_s25 = int_to_ptr.vmem [resolvable:$true] %s34_s25  ;;  %s1893_s27 = int_to_ptr.vmem [resolvable:$true] %s22_s27 }
   0x5   :  { %s1718_s30 = scalar_lea.hbm %s2120_s1, 512 }
   0x6   :  { %p1719_p0 = scmp.ne.s32.totalorder %s2120_s1, %s1718_s30  ;;  %p1722_p1 = scmp.lt.u32.totalorder %s1718_s30, %s2120_s1 }
   0x8   :  { %p1724_p2 = pnand %p1722_p1, %p1719_p0 }
   0xa   :  { %1727 = shalt.err (!%p1724_p2)
}
   0xb   :  { %s1728_s12 = scalar_lea.vmem %s35_s25, 512  ;;  %p1733_p4 = scmp.lt.s32.totalorder %s35_s25, %s35_s25 }
   0xc   :  { %p1729_p3 = scmp.ne.s32.totalorder %s35_s25, %s1728_s12  ;;  %p1734_p5 = scmp.lt.s32.totalorder %s1728_s12, %s1728_s12 }
   0xe   :  { %p1735_p6 = por %p1734_p5, %p1733_p4 }
  0x10   :  { %p1736_p7 = pnand %p1735_p6, %p1729_p3 }
  0x12   :  { %1739 = shalt.err (!%p1736_p7)
}
  0x13   :  { %s1838_s13 = smov 128   ;;  %s1839_s14 = smov 8  }
  0x14   :  { %40 = dma.hbm_to_vmem [thread:$0]  %s2120_s1, 512, %s35_s25, [#allocation6], %s1838_s13, %s1838_s13, %s1839_s14  }
  0x15   :  { %s1740_s19 = scalar_lea.hbm %s2119_s0, 512 }
  0x16   :  { %p1741_p8 = scmp.ne.s32.totalorder %s2119_s0, %s1740_s19  ;;  %p1744_p9 = scmp.lt.u32.totalorder %s1740_s19, %s2119_s0 }
  0x18   :  { %p1746_p10 = pnand %p1744_p9, %p1741_p8 }
  0x1a   :  { %1749 = shalt.err (!%p1746_p10)
}
  0x1b   :  { %s1750_s24 = scalar_lea.vmem %s1893_s27, 512  ;;  %p1755_p12 = scmp.lt.s32.totalorder %s1893_s27, %s1893_s27 }
  0x1c   :  { %p1751_p11 = scmp.ne.s32.totalorder %s1893_s27, %s1750_s24  ;;  %p1756_p13 = scmp.lt.s32.totalorder %s1750_s24, %s1750_s24 }
  0x1e   :  { %p1757_p0 = por %p1756_p13, %p1755_p12 }
  0x20   :  { %p1758_p1 = pnand %p1757_p0, %p1751_p11 }
  0x22   :  { %1761 = shalt.err (!%p1758_p1)
}
  0x23   :  { %28 = dma.hbm_to_vmem [thread:$0]  %s2119_s0, 512, %s1893_s27, [#allocation3], %s1838_s13, %s1838_s13, %s1839_s14  }
  0x24   :  { %s1840_s26 = smov [#allocation7]   ;;  %s1841_s29 = smov [#allocation8]  }
  0x25   :  { %s46_s28 = sshll.u32 %s1840_s26, 4  ;;  %s62_s30 = sshll.u32 %s1841_s29, 4  ;;  %s47_s28 = int_to_ptr.vmem [resolvable:$true] %s46_s28  ;;  %s1930_s30 = int_to_ptr.vmem [resolvable:$true] %s62_s30 }
  0x26   :  { %s1762_s10 = scalar_lea.hbm %s2121_s2, 512 }
  0x27   :  { %p1763_p2 = scmp.ne.s32.totalorder %s2121_s2, %s1762_s10  ;;  %p1766_p3 = scmp.lt.u32.totalorder %s1762_s10, %s2121_s2 }
  0x29   :  { %p1768_p4 = pnand %p1766_p3, %p1763_p2 }
  0x2b   :  { %1771 = shalt.err (!%p1768_p4)
}
  0x2c   :  { %s1772_s0 = scalar_lea.vmem %s47_s28, 512  ;;  %p1777_p6 = scmp.lt.s32.totalorder %s47_s28, %s47_s28 }
  0x2d   :  { %p1773_p5 = scmp.ne.s32.totalorder %s47_s28, %s1772_s0  ;;  %p1778_p7 = scmp.lt.s32.totalorder %s1772_s0, %s1772_s0 }
  0x2f   :  { %p1779_p8 = por %p1778_p7, %p1777_p6 }
  0x31   :  { %p1780_p9 = pnand %p1779_p8, %p1773_p5 }
  0x33   :  { %1783 = shalt.err (!%p1780_p9)
}
  0x34   :  { %52 = dma.hbm_to_vmem [thread:$0]  %s2121_s2, 512, %s47_s28, [#allocation6], %s1838_s13, %s1838_s13, %s1839_s14  }
  0x35   :  { %s1784_s20 = scalar_lea.hbm %s2124_s5, 512 }
  0x36   :  { %p1785_p10 = scmp.ne.s32.totalorder %s2124_s5, %s1784_s20  ;;  %p1788_p11 = scmp.lt.u32.totalorder %s1784_s20, %s2124_s5 }
  0x38   :  { %p1790_p12 = pnand %p1788_p11, %p1785_p10 }
  0x3a   :  { %1793 = shalt.err (!%p1790_p12)
}
  0x3b   :  { %s1794_s1 = scalar_lea.vmem %s1930_s30, 512  ;;  %p1799_p0 = scmp.lt.s32.totalorder %s1930_s30, %s1930_s30 }
  0x3c   :  { %p1795_p13 = scmp.ne.s32.totalorder %s1930_s30, %s1794_s1  ;;  %p1800_p1 = scmp.lt.s32.totalorder %s1794_s1, %s1794_s1 }
  0x3e   :  { %p1801_p2 = por %p1800_p1, %p1799_p0 }
  0x40   :  { %p1802_p3 = pnand %p1801_p2, %p1795_p13 }
  0x42   :  { %1805 = shalt.err (!%p1802_p3)
}
  0x43   :  { %68 = dma.hbm_to_vmem [thread:$0]  %s2124_s5, 512, %s1930_s30, [#allocation9], %s1838_s13, %s1838_s13, %s1839_s14  }
  0x44   :  { %1828 = dma.done.wait [#allocation3], 512  }
  0x45   :  { %1829 = vsyncadd [#allocation3], 4294966784 }
  0x46   :  { %1830 = dma.done.wait [#allocation6], 1024  }
  0x47   :  { %1831 = vsyncadd [#allocation6], 4294966272 }
  0x48   :  { %1832 = dma.done.wait [#allocation9], 512  }
  0x49   :  { %1833 = vsyncadd [#allocation9], 4294966784  ;;  %v1842_v0 = vmov 0.0|0.0   ;;  %vm1843_vm0 = vmmov 0   ;;  %v1844_v1 = vmov 0.0   ;;  %v93_v2 = vld [vmem:[#allocation5] sm:$0xff] }
  0x4a   :  { %1649 = vmatprep.subr.bf16.mxu0 %v1842_v0  ;;  %1525 = vmatprep.mubr.msk.f32.mxu0 %vm1843_vm0, %v1844_v1  ;;  %v94_v3 = vld [vmem:[#allocation5 + $0x8] sm:$0xff]  ;;  %v95_v4 = vld [vmem:[#allocation5 + $0x10] sm:$0xff]  ;;  %v96_v6 = vld [vmem:[#allocation5 + $0x18] sm:$0xff]  ;;  %vm104_vm1 = vcmask 261120   ;;  %vm368_vm2 = vcmask 523520   ;;  %s1846_s28 = smov 96  }
  0x4b   :  { %v1650_v5 = vpack.c.bf16 %v94_v3, %v93_v2  ;;  %v81_v7 = vld [vmem:[#allocation2] sm:$0xff]  ;;  %v82_v8 = vld [vmem:[#allocation2 + $0x8] sm:$0xff]  ;;  %v83_v9 = vld [vmem:[#allocation2 + $0x10] sm:$0xff]  ;;  %v1653_v11 = vpack.c.bf16 %v96_v6, %v95_v4  ;;  %s1847_s29 = smov 88   ;;  %s1848_s30 = smov 72   ;;  %vm391_vm3 = vcmask 64512  }
  0x4c   :  { %v89_v10 = vadd.f32 %v82_v8, %v81_v7  ;;  %1536 = vmatprep.mubr.msk.f32.mxu1 %vm104_vm1, %v81_v7  ;;  %v84_v12 = vld [vmem:[#allocation2 + $0x18] sm:$0xff]  ;;  %v1415_v16 = vld [vmem:[%s2122_s3] ss:$0 sm:$0xff]  ;;  %v1983_v31 = vld [vmem:[#allocation8 + $0x8] sm:$0xff]  ;;  %s1845_s3 = smov 80   ;;  %s1849_s10 = smov 120  }
  0x4d   :  { %1651 = vmatpush3.bf16.msra.mxu0 %v1650_v5  ;;  %v1981_v30 = vld [vmem:[#allocation8] sm:$0xff]  ;;  %v179_v34 = vld [vmem:[#allocation7 + $0x8] sm:$0xff]  ;;  %v1987_v35 = vld [vmem:[#allocation8 + $0x10] sm:$0xff]  ;;  %s1850_s11 = smov 112  }
  0x4e   :  { %1652 = vmatprep.subr.bf16.mxu0 %v1842_v0  ;;  %v90_v13 = vadd.f32 %v89_v10, %v83_v9  ;;  %v178_v32 = vld [vmem:[#allocation7] sm:$0xff]  ;;  %v1664_v33 = vpack.c.bf16 %v1983_v31, %v1981_v30  ;;  %v1989_v36 = vld [vmem:[#allocation8 + $0x18] sm:$0xff]  ;;  %v180_v41 = vld [vmem:[#allocation7 + $0x10] sm:$0xff] }
  0x4f   :  { %v1655_v37 = vpack.c.bf16 %v179_v34, %v178_v32  ;;  %v1667_v38 = vpack.c.bf16 %v1989_v36, %v1987_v35  ;;  %v181_v42 = vld [vmem:[#allocation7 + $0x18] sm:$0xff]  ;;  %v1417_v61 = vld [vmem:[%s2123_s4] ss:$0 sm:$0xff]  ;;  %s1851_s4 = smov 104  }
  0x50   :  { %v91_v14 = vadd.f32 %v90_v13, %v84_v12  ;;  %v1659_v44 = vpack.c.bf16 %v181_v42, %v180_v41 }
  0x51   :  { %1654 = vmatpush3.bf16.msra.mxu0 %v1653_v11  ;;  %1656 = vmatprep.subr.bf16.mxu1 %v1655_v37 }
  0x52   :  { %v92_v15 = vmul.f32 0.25, %v91_v14  ;;  %1663 = vmatprep.subr.bf16.mxu0 %v1842_v0  ;;  %1658 = vmatpush3.bf16.msra.mxu1 %v1655_v37 }
  0x53   :  { %1660 = vmatprep.subr.bf16.mxu1 %v1659_v44 }
  0x54   :  { %1526 = vmatmul.mubr.msk.f32.vlgmr.msra.gmra.mrb[0].mxu0 %vm104_vm1, %v92_v15 }
  0x55   :  { %1550 = vmatprep.mubr.msk.f32.mxu0 %vm1843_vm0, %v1844_v1  ;;  %1665 = vmatpush3.bf16.msra.mxu0 %v1664_v33 }
  0x56   :  { %1666 = vmatprep.subr.bf16.mxu0 %v1842_v0  ;;  %1662 = vmatpush3.bf16.msra.mxu1 %v1659_v44 }
  0x57   :  { %1553 = vmatprep.subr.mxu1 %v1844_v1 }
  0x59   :  { %1668 = vmatpush3.bf16.msra.mxu0 %v1667_v38  ;;  %1537 = vmatmul.mubr.msk.f32.vlgmr.msra.gmra.mrb[0].mxu1 %vm104_vm1, %v82_v8 }
  0x5a   :  { %1558 = vmatprep.subr.mxu0 %v1844_v1  ;;  %1539 = vmatprep.mubr.msk.f32.mxu1 %vm104_vm1, %v83_v9 }
  0x5d   :  { %1540 = vmatmul.mubr.msk.f32.gmra.mrb[2].mxu1 %vm104_vm1, %v84_v12 }
  0x5e   :  { %1555 = vmatprep.mubr.msk.f32.mxu1 %vm1843_vm0, %v1844_v1 }
 0x127   :  { %v174_v17 = vpop.f32.mrb[0].mxu0 }
 0x128   :  { %v175_v18 = vadd.f32 %v1415_v16, %v174_v17  ;;  %v1527_v19 = vpop.f32.mrb[1].mxu0 }
 0x12a   :  { %v369_v20 = vsel %vm368_vm2, %v175_v18, -inf  ;;  %v286_v21 = vsel %vm104_vm1, %v175_v18, -inf }
 0x12b   :  { %v370_v22 = vrot.slane %v369_v20, 4  ;;  %287 = vmax.xlane.f32.xlu0 %v286_v21 }
 0x12c   :  { %v1538_v60 = vpop.f32.mrb[0].mxu1 }
 0x12d   :  { %v371_v23 = vmax.f32 %v369_v20, %v370_v22  ;;  %v273_v62 = vadd.f32 %v1538_v60, %v1417_v61  ;;  %v267_v63 = vpop.f32.mrb[1].mxu1 }
 0x12e   :  { %v268_v5 = vadd.f32 %v1417_v61, %v267_v63 }
 0x12f   :  { %v372_v24 = vrot.slane %v371_v23, 2 }
 0x130   :  { %v1541_v7 = vpop.f32.mrb[2].mxu1 }
 0x131   :  { %v373_v25 = vmax.f32 %v371_v23, %v372_v24  ;;  %v283_v8 = vadd.f32 %v1541_v7, %v1417_v61  ;;  %v277_v9 = vpop.f32.mrb[3].mxu1 }
 0x132   :  { %v278_v10 = vadd.f32 %v1417_v61, %v277_v9 }
 0x133   :  { %v374_v26 = vrot.slane %v373_v25, 1 }
 0x135   :  { %v375_v27 = vmax.f32 %v373_v25, %v374_v26 }
 0x137   :  { %v376_v28 = vsub.f32 %v175_v18, %v375_v27 }
 0x139   :  { %v377_v29 = vmul.f32 1.442695, %v376_v28 }
 0x13b   :  { %1710 = vpow2.f32 %v377_v29 }
 0x145   :  { %v1711_v39 = vpop.eup %1710 }
 0x146   :  { %v379_v40 = vsel %vm368_vm2, %v1711_v39, 0.0 }
 0x147   :  { %v380_v43 = vrot.slane %v379_v40, 4 }
 0x149   :  { %v381_v45 = vadd.f32 %v380_v43, %v379_v40 }
 0x14b   :  { %v382_v46 = vrot.slane %v381_v45, 2 }
 0x14d   :  { %v383_v47 = vadd.f32 %v382_v46, %v381_v45 }
 0x14f   :  { %v384_v48 = vrot.slane %v383_v47, 1 }
 0x151   :  { %v385_v49 = vadd.f32 %v384_v48, %v383_v47 }
 0x153   :  { %1712 = vrcp.f32 %v385_v49 }
 0x15d   :  { %v1713_v50 = vpop.eup %1712 }
 0x15e   :  { %v387_v51 = vmul.f32 %v1713_v50, %v1711_v39 }
 0x160   :  { %547 = vrot.lane.b32.xlu1 %v387_v51, %s1845_s3  ;;  %389 = vrot.lane.b32.xlu0 %v387_v51, %s1846_s28 }
 0x164   :  { %469 = vrot.lane.b32.xlu0 %v387_v51, %s1847_s29 }
 0x168   :  { %625 = vrot.lane.b32.xlu0 %v387_v51, %s1848_s30 }
 0x1b8   :  { %v288_v52 = vpop.xlane.xlu0 %287 }
 0x1b9   :  { %v289_v53 = vsub.f32 %v175_v18, %v288_v52 }
 0x1bb   :  { %v290_v54 = vmul.f32 1.442695, %v289_v53 }
 0x1bd   :  { %1714 = vpow2.f32 %v290_v54 }
 0x1c7   :  { %v1715_v55 = vpop.eup %1714 }
 0x1c8   :  { %1551 = vmatmul.mubr.msk.f32.vlgmr.msra.gmra.mrb[2].mxu0 %vm104_vm1, %v1715_v55 }
 0x1c9   :  { %1560 = vmatprep.mubr.msk.f32.mxu0 %vm1843_vm0, %v1844_v1 }
 0x1d2   :  { %v390_v56 = vpop.permute.xlu0 %389  ;;  %v548_v6 = vpop.permute.xlu1 %547 }
 0x1d3   :  { %1554 = vmatpush3.xpose.msk.msra.mxu1 %vm391_vm3, %v390_v56 }
 0x1d4   :  { %1563 = vmatprep.subr.mxu1 %v1844_v1 }
 0x1d6   :  { %v470_v57 = vpop.permute.xlu0 %469 }
 0x1d7   :  { %1559 = vmatpush3.xpose.msk.msra.mxu0 %vm391_vm3, %v470_v57 }
 0x1d8   :  { %1568 = vmatprep.subr.mxu0 %v1844_v1 }
 0x1da   :  { %v626_v11 = vpop.permute.xlu0 %625 }
 0x29b   :  { %v361_v58 = vpop.f32.mrb[2].mxu0 }
 0x29c   :  { %1716 = vrcp.f32 %v361_v58  ;;  %v1552_v59 = vpop.f32.mrb[3].mxu0 }
 0x2a6   :  { %v1717_v2 = vpop.eup %1716 }
 0x2a7   :  { %v366_v3 = vmul.f32 %v1717_v2, %v1715_v55 }
 0x2a9   :  { %v2012_v4 = vmul.f32 0.35355338, %v366_v3 }
 0x2ab   :  { %467 = vrot.lane.b32.xlu0 %v2012_v4, %s1849_s10  ;;  %545 = vrot.lane.b32.xlu1 %v2012_v4, %s1850_s11 }
 0x2ac   :  { %1556 = vmatmul.mubr.msk.f32.vlgmr.msra.gmra.mrb[4].mxu1 %vm391_vm3, %v2012_v4 }
 0x2ad   :  { %1564 = vmatpush3.xpose.msk.msra.mxu1 %vm391_vm3, %v548_v6  ;;  %1565 = vmatprep.mubr.msk.f32.mxu1 %vm1843_vm0, %v1844_v1 }
 0x2ae   :  { %1573 = vmatprep.subr.mxu1 %v268_v5 }
 0x2af   :  { %623 = vrot.lane.b32.xlu0 %v2012_v4, %s1851_s4 }
 0x2d4   :  { %706 = vxpose.xlu1.b32.start.end [1/1] (short) (narrow) %v390_v56, 32 }
 0x31d   :  { %v468_v12 = vpop.permute.xlu0 %467  ;;  %v546_v13 = vpop.permute.xlu1 %545 }
 0x31e   :  { %1561 = vmatmul.mubr.msk.f32.vlgmr.msra.gmra.mrb[4].mxu0 %vm391_vm3, %v468_v12  ;;  %1566 = vmatmul.mubr.msk.f32.vlgmr.msra.gmra.mrb[6].mxu1 %vm391_vm3, %v546_v13 }
 0x31f   :  { %1569 = vmatpush3.xpose.msk.msra.mxu0 %vm391_vm3, %v626_v11  ;;  %1570 = vmatprep.mubr.msk.f32.mxu0 %vm1843_vm0, %v1844_v1 }
 0x320   :  { %1574 = vmatpush3.msra.mxu1 %v268_v5  ;;  %1669 = vmatprep.subr.bf16.mxu0 %v1842_v0 }
 0x321   :  { %v624_v14 = vpop.permute.xlu0 %623  ;;  %1592 = vmatprep.subr.mxu1 %v273_v62 }
 0x322   :  { %1571 = vmatmul.mubr.msk.f32.vlgmr.msra.gmra.mrb[6].mxu0 %vm391_vm3, %v624_v14 }
 0x323   :  { %1589 = vmatprep.mubr.msk.f32.mxu0 %vm1843_vm0, %v1844_v1 }
 0x354   :  { %v722_v15 = vpop.trf.xlu1 }
 0x355   :  { %1575 = vmatprep.mubr.msk.f32.mxu1 %vm391_vm3, %v722_v15 }
 0x358   :  { %v723_v16 = vpop.trf.xlu1 }
 0x359   :  { %1576 = vmatmul.mubr.msk.f32.vlgmr.msra.gmra.mrb[8].mxu1 %vm391_vm3, %v723_v16 }
 0x35a   :  { %1593 = vmatpush3.msra.mxu1 %v273_v62 }
 0x35b   :  { %1611 = vmatprep.subr.mxu1 %v278_v10 }
 0x35c   :  { %v724_v17 = vpop.trf.xlu1 }
 0x35d   :  { %1578 = vmatprep.mubr.msk.f32.mxu1 %vm391_vm3, %v724_v17 }
 0x360   :  { %v725_v18 = vpop.trf.xlu1 }
 0x361   :  { %1579 = vmatmul.mubr.msk.f32.gmra.mrb[10].mxu1 %vm391_vm3, %v725_v18 }
 0x362   :  { %1594 = vmatprep.mubr.msk.f32.mxu1 %vm391_vm3, %v722_v15 }
 0x365   :  { %1595 = vmatmul.mubr.msk.f32.vlgmr.msra.gmra.mrb[12].mxu1 %vm391_vm3, %v723_v16 }
 0x366   :  { %1612 = vmatpush3.msra.mxu1 %v278_v10  ;;  %1597 = vmatprep.mubr.msk.f32.mxu1 %vm391_vm3, %v724_v17 }
 0x367   :  { %1630 = vmatprep.subr.mxu1 %v283_v8 }
 0x369   :  { %1598 = vmatmul.mubr.msk.f32.gmra.mrb[14].mxu1 %vm391_vm3, %v725_v18 }
 0x36a   :  { %1613 = vmatprep.mubr.msk.f32.mxu1 %vm391_vm3, %v722_v15 }
 0x36d   :  { %1614 = vmatmul.mubr.msk.f32.vlgmr.msra.gmra.mrb[16].mxu1 %vm391_vm3, %v723_v16 }
 0x36e   :  { %1631 = vmatpush3.msra.mxu1 %v283_v8  ;;  %1616 = vmatprep.mubr.msk.f32.mxu1 %vm391_vm3, %v724_v17 }
 0x371   :  { %1617 = vmatmul.mubr.msk.f32.gmra.mrb[18].mxu1 %vm391_vm3, %v725_v18 }
 0x372   :  { %1632 = vmatprep.mubr.msk.f32.mxu1 %vm391_vm3, %v722_v15 }
 0x375   :  { %1633 = vmatmul.mubr.msk.f32.vlgmr.msra.gmra.mrb[20].mxu1 %vm391_vm3, %v723_v16 }
 0x376   :  { %1635 = vmatprep.mubr.msk.f32.mxu1 %vm391_vm3, %v724_v17 }
 0x379   :  { %1636 = vmatmul.mubr.msk.f32.gmra.mrb[22].mxu1 %vm391_vm3, %v725_v18 }
 0x37f   :  { %v463_v19 = vpop.f32.mrb[4].mxu1 }
 0x380   :  { %701 = vst.msk [vmem:[%s2126_s7] sm:$0xff] %vm391_vm3, %v463_v19  ;;  %v1557_v20 = vpop.f32.mrb[5].mxu1 }
 0x3f1   :  { %v541_v21 = vpop.f32.mrb[4].mxu0  ;;  %v619_v22 = vpop.f32.mrb[6].mxu1 }
 0x3f2   :  { %702 = vst.msk [vmem:[%s2126_s7 + $0x8] sm:$0xff] %vm391_vm3, %v541_v21  ;;  %703 = vst.msk [vmem:[%s2126_s7 + $0x10] sm:$0xff] %vm391_vm3, %v619_v22  ;;  %v1562_v23 = vpop.f32.mrb[5].mxu0  ;;  %v1567_v24 = vpop.f32.mrb[7].mxu1 }
 0x3f5   :  { %v697_v25 = vpop.f32.mrb[6].mxu0 }
 0x3f6   :  { %704 = vst.msk [vmem:[%s2126_s7 + $0x18] sm:$0xff] %vm391_vm3, %v697_v25  ;;  %v1572_v26 = vpop.f32.mrb[7].mxu0  ;;  %s1852_s7 = smov [#allocation10]  }
 0x3f7   :  { %s1397_s20 = sshll.u32 %s1852_s7, 4  ;;  %s1398_s20 = int_to_ptr.vmem [resolvable:$true] %s1397_s20 }
 0x3f8   :  { %s1806_s21 = scalar_lea.vmem %s1398_s20, 512  ;;  %p1811_p5 = scmp.lt.s32.totalorder %s1398_s20, %s1398_s20 }
 0x3f9   :  { %p1807_p4 = scmp.ne.s32.totalorder %s1398_s20, %s1806_s21  ;;  %p1812_p6 = scmp.lt.s32.totalorder %s1806_s21, %s1806_s21 }
 0x3fb   :  { %p1813_p7 = por %p1812_p6, %p1811_p5 }
 0x3fd   :  { %p1814_p8 = pnand %p1813_p7, %p1807_p4 }
 0x42c   :  { %v1577_v27 = vpop.f32.mrb[8].mxu1 }
 0x42d   :  { %v836_v28 = vmul.f32 %v1577_v27, %v1983_v31  ;;  %v816_v29 = vpop.f32.mrb[9].mxu1 }
 0x42e   :  { %v835_v32 = vmul.f32 %v816_v29, %v1981_v30 }
 0x430   :  { %v1670_v33 = vpack.c.bf16 %v836_v28, %v835_v32 }
 0x432   :  { %1671 = vmatpush3.bf16.msra.mxu0 %v1670_v33 }
 0x433   :  { %1672 = vmatprep.subr.bf16.mxu0 %v1842_v0 }
 0x434   :  { %v1580_v34 = vpop.f32.mrb[10].mxu1 }
 0x435   :  { %v838_v37 = vmul.f32 %v1580_v34, %v1989_v36  ;;  %v826_v38 = vpop.f32.mrb[11].mxu1 }
 0x436   :  { %v837_v39 = vmul.f32 %v826_v38, %v1987_v35 }
 0x438   :  { %v1673_v40 = vpack.c.bf16 %v838_v37, %v837_v39  ;;  %v1596_v41 = vpop.f32.mrb[12].mxu1 }
 0x439   :  { %v997_v42 = vmul.f32 %v1596_v41, %v1983_v31  ;;  %v977_v43 = vpop.f32.mrb[13].mxu1 }
 0x43a   :  { %v996_v44 = vmul.f32 %v977_v43, %v1981_v30  ;;  %1674 = vmatpush3.bf16.msra.mxu0 %v1673_v40 }
 0x43b   :  { %1675 = vmatprep.subr.bf16.mxu0 %v1842_v0 }
 0x43c   :  { %v1676_v45 = vpack.c.bf16 %v997_v42, %v996_v44  ;;  %v1599_v46 = vpop.f32.mrb[14].mxu1 }
 0x43d   :  { %v999_v47 = vmul.f32 %v1599_v46, %v1989_v36  ;;  %1590 = vmatmul.mubr.msk.f32.vlgmr.msra.gmra.mrb[8].mxu0 %vm104_vm1, %v2012_v4  ;;  %v987_v48 = vpop.f32.mrb[15].mxu1 }
 0x43e   :  { %v998_v49 = vmul.f32 %v987_v48, %v1987_v35  ;;  %1677 = vmatpush3.bf16.msra.mxu0 %v1676_v45  ;;  %1608 = vmatprep.mubr.msk.f32.mxu0 %vm1843_vm0, %v1844_v1 }
 0x43f   :  { %1678 = vmatprep.subr.bf16.mxu0 %v1842_v0 }
 0x440   :  { %v1679_v50 = vpack.c.bf16 %v999_v47, %v998_v49  ;;  %v1615_v51 = vpop.f32.mrb[16].mxu1 }
 0x441   :  { %v1156_v52 = vmul.f32 %v1615_v51, %v1983_v31  ;;  %v1136_v53 = vpop.f32.mrb[17].mxu1 }
 0x442   :  { %v1155_v54 = vmul.f32 %v1136_v53, %v1981_v30  ;;  %1680 = vmatpush3.bf16.msra.mxu0 %v1679_v50 }
 0x443   :  { %1681 = vmatprep.subr.bf16.mxu0 %v1842_v0 }
 0x444   :  { %v1682_v55 = vpack.c.bf16 %v1156_v52, %v1155_v54  ;;  %v1618_v56 = vpop.f32.mrb[18].mxu1 }
 0x445   :  { %v1158_v57 = vmul.f32 %v1618_v56, %v1989_v36  ;;  %1609 = vmatmul.mubr.msk.f32.vlgmr.msra.gmra.mrb[10].mxu0 %vm104_vm1, %v2012_v4  ;;  %v1146_v58 = vpop.f32.mrb[19].mxu1 }
 0x446   :  { %v1157_v59 = vmul.f32 %v1146_v58, %v1987_v35  ;;  %1683 = vmatpush3.bf16.msra.mxu0 %v1682_v55  ;;  %1627 = vmatprep.mubr.msk.f32.mxu0 %vm1843_vm0, %v1844_v1 }
 0x447   :  { %1684 = vmatprep.subr.bf16.mxu0 %v1842_v0 }
 0x448   :  { %v1685_v60 = vpack.c.bf16 %v1158_v57, %v1157_v59  ;;  %v1634_v61 = vpop.f32.mrb[20].mxu1 }
 0x449   :  { %v1315_v62 = vmul.f32 %v1634_v61, %v1983_v31  ;;  %v1295_v63 = vpop.f32.mrb[21].mxu1 }
 0x44a   :  { %v1314_v2 = vmul.f32 %v1295_v63, %v1981_v30  ;;  %1686 = vmatpush3.bf16.msra.mxu0 %v1685_v60 }
 0x44b   :  { %1687 = vmatprep.subr.bf16.mxu0 %v1842_v0 }
 0x44c   :  { %v1688_v3 = vpack.c.bf16 %v1315_v62, %v1314_v2  ;;  %v1637_v5 = vpop.f32.mrb[22].mxu1 }
 0x44d   :  { %v1317_v6 = vmul.f32 %v1637_v5, %v1989_v36  ;;  %1628 = vmatmul.mubr.msk.f32.vlgmr.msra.gmra.mrb[12].mxu0 %vm104_vm1, %v2012_v4  ;;  %v1305_v7 = vpop.f32.mrb[23].mxu1 }
 0x44e   :  { %v1316_v8 = vmul.f32 %v1305_v7, %v1987_v35  ;;  %1689 = vmatpush3.bf16.msra.mxu0 %v1688_v3  ;;  %1646 = vmatprep.mubr.msk.f32.mxu0 %vm1843_vm0, %v1844_v1 }
 0x44f   :  { %1690 = vmatprep.subr.bf16.mxu0 %v1842_v0 }
 0x450   :  { %v1691_v30 = vpack.c.bf16 %v1317_v6, %v1316_v8 }
 0x452   :  { %1692 = vmatpush3.bf16.msra.mxu0 %v1691_v30 }
 0x455   :  { %1647 = vmatmul.mubr.msk.f32.vlgmr.msra.gmra.mrb[14].mxu0 %vm104_vm1, %v2012_v4 }
 0x510   :  { %v907_v31 = vpop.f32.mrb[8].mxu0 }
 0x511   :  { %1388 = vst.msk [vmem:[#allocation10] sm:$0xff] %vm104_vm1, %v907_v31  ;;  %v1591_v36 = vpop.f32.mrb[9].mxu0 }
 0x518   :  { %v1066_v9 = vpop.f32.mrb[10].mxu0 }
 0x519   :  { %1389 = vst.msk [vmem:[#allocation10 + $0x8] sm:$0xff] %vm104_vm1, %v1066_v9  ;;  %v1610_v10 = vpop.f32.mrb[11].mxu0 }
 0x520   :  { %v1225_v35 = vpop.f32.mrb[12].mxu0 }
 0x521   :  { %1390 = vst.msk [vmem:[#allocation10 + $0x10] sm:$0xff] %vm104_vm1, %v1225_v35  ;;  %v1629_v11 = vpop.f32.mrb[13].mxu0 }
 0x528   :  { %v1384_v0 = vpop.f32.mrb[14].mxu0 }
 0x529   :  { %1391 = vst.msk [vmem:[#allocation10 + $0x18] sm:$0xff] %vm104_vm1, %v1384_v0  ;;  %v1648_v1 = vpop.f32.mrb[15].mxu0 }
 0x52a   :  { %1817 = shalt.err (!%p1814_p8)
}
 0x52b   :  { %s1818_s24 = scalar_lea.hbm %s2125_s6, 512 }
 0x52c   :  { %p1819_p9 = scmp.ne.s32.totalorder %s2125_s6, %s1818_s24  ;;  %p1822_p10 = scmp.lt.u32.totalorder %s1818_s24, %s2125_s6 }
 0x52e   :  { %p1824_p11 = pnand %p1822_p10, %p1819_p9 }
 0x530   :  { %1827 = shalt.err (!%p1824_p11)
}
 0x531   :  { %1403 = dma.vmem_to_hbm [thread:$0]  %s1398_s20, 512, %s2125_s6, [#allocation4], %s1838_s13, %s1838_s13, %s1839_s14  }
 0x532   :  { %1834 = dma.done.wait [#allocation4], 512  }
 0x533   :  { %1835 = vsyncadd [#allocation4], 4294966784 }
 0x534   :  { %1411 = vsyncpa [#allocation3], 1 }
 0x535   :  { %1412 = vsyncpa [#allocation6], 1 }
 0x536   :  { %1413 = vsyncpa [#allocation9], 1 }
 0x537   :  { %1414 = vsyncpa [#allocation4], 1 }

</bundles_post_ra>
